<compile_context>
chip_gen: v7x
topology: tpu7x:2x2x1
jax: 0.10.0
libtpu: 0.0.40
codegen_flags: <defaults>
</compile_context>

<pallas_src>
import jax
import jax.numpy as jnp
from jax import lax
from jax.experimental import pallas as pl
from jax.experimental.pallas import tpu as pltpu


def se_select_kernel(x_ref, w1_ref, w2_ref, o_ref):
    # x_ref : (Bt, C, HW)     input tile (f32 or bf16)
    # w1_ref: (C, CR)    f32  (transposed PyTorch Linear weight)
    # w2_ref: (CR, C)    f32
    # o_ref : (Bt, K*HW)      lane-dense output slab
    Bt, C, HW = x_ref.shape
    K = o_ref.shape[1] // HW

    xf = x_ref[...].astype(jnp.float32)                       # (Bt, C, HW)

    # --- global average pool over spatial (lane reduction), f32 accumulate ---
    y = jnp.mean(xf, axis=2)                                  # (Bt, C)

    # --- SE MLP: Linear -> ReLU -> Linear -> Sigmoid (tiny; latency only) ---
    h = jnp.maximum(
        jnp.dot(y, w1_ref[...], preferred_element_type=jnp.float32), 0.0)
    s = jax.nn.sigmoid(
        jnp.dot(h, w2_ref[...], preferred_element_type=jnp.float32))  # (Bt, C)

    # --- top-K: K sequential masked-argmax passes, lower-index tie-break
    #     (matches lax.top_k / torch.topk semantics of the reference) ---
    c_iota = lax.broadcasted_iota(jnp.int32, (Bt, C), 1).astype(jnp.float32)
    big = float(C)                                            # > any valid index
    s_work = s
    onehots, idxs, gates = [], [], []
    for _ in range(K):
        m = jnp.max(s_work, axis=1, keepdims=True)            # (Bt, 1) gate value
        idx = jnp.min(jnp.where(s_work == m, c_iota, big),
                      axis=1, keepdims=True)                  # (Bt, 1) first max
        onehot = (c_iota == idx).astype(jnp.float32)          # (Bt, C) exact one-hot
        onehots.append(onehot)
        idxs.append(idx)
        gates.append(m)
        # sigmoid outputs lie in (0,1); -1 removes the channel from later passes
        s_work = jnp.where(c_iota == idx, -1.0, s_work)

    # --- order the K selections by ascending channel index (== argsort of the
    #     top-k indices in the reference); K is small, so this is K^2 cheap
    #     vector ops on (Bt,1)/(Bt,C) ---
    ranks = []
    for k in range(K):
        r = jnp.zeros_like(idxs[k])
        for k2 in range(K):
            if k2 != k:
                r = r + (idxs[k2] < idxs[k]).astype(jnp.float32)
        ranks.append(r)

    slot_rows = []
    for j in range(K):
        row = jnp.zeros((Bt, C), jnp.float32)
        for k in range(K):
            row = row + jnp.where(ranks[k] == j, onehots[k] * gates[k], 0.0)
        slot_rows.append(row[:, None, :])
    G = slot_rows[0] if K == 1 else jnp.concatenate(slot_rows, axis=1)  # (Bt,K,C)

    # --- gather-and-scale as one MXU contraction over channels ---
    out = jnp.einsum('bkc,bcl->bkl', G, xf,
                     preferred_element_type=jnp.float32)      # (Bt, K, HW)

    o_ref[...] = out.reshape(Bt, K * HW).astype(o_ref.dtype)


def se_attention(x, w1, w2, K):
    b, c, h, w = x.shape
    hw = h * w
    assert hw % 128 == 0, "flattened spatial must be lane-aligned (multiple of 128)"
    x3 = x.reshape(b, c, hw)      # keep caller dtype; bf16 halves HBM DMA bytes

    # batch tile: keep the output slab's (8,128) layout rules satisfied
    if b <= 8:
        bt = b
    elif b % 8 == 0:
        bt = 8
    else:
        bt = b                    # fall back to a single batch block

    out = pl.pallas_call(
        se_select_kernel,
        out_shape=jax.ShapeDtypeStruct((b, K * hw), x.dtype),
        grid=(b // bt,),
        in_specs=[
            pl.BlockSpec((bt, c, hw), lambda i: (i, 0, 0)),
            pl.BlockSpec(w1.shape, lambda i: (0, 0)),   # weights stay resident
            pl.BlockSpec(w2.shape, lambda i: (0, 0)),
        ],
        out_specs=pl.BlockSpec((bt, K * hw), lambda i: (i, 0)),
        compiler_params=pltpu.CompilerParams(
            dimension_semantics=("parallel",)),
    )(x3, w1.astype(jnp.float32), w2.astype(jnp.float32))
    return out.reshape(b, K, h, w)


def se_attention_ref(x, w1, w2, K):
    # pure-JAX reference mirroring the PyTorch forward
    b = x.shape[0]
    y = x.astype(jnp.float32).mean(axis=(2, 3))
    s = jax.nn.sigmoid(jnp.maximum(y @ w1, 0.0) @ w2)
    vals, idxs = lax.top_k(s, K)
    order = jnp.argsort(idxs, axis=1)
    sidx = jnp.take_along_axis(idxs, order, axis=1)
    svals = jnp.take_along_axis(vals, order, axis=1)
    new = x[jnp.arange(b)[:, None], sidx]              # (B, K, H, W)
    return new * svals[:, :, None, None]


if __name__ == "__main__":
    key = jax.random.PRNGKey(0)
    B, C, H, W = 2, 18, 16, 16        # channel=18 as in the module __init__
    K, reduction = 1, 3
    CR = C // reduction

    kx, k1, k2 = jax.random.split(key, 3)
    x = jax.random.normal(kx, (B, C, H, W), jnp.float32)
    # PyTorch nn.Linear weights are (out, in); stored pre-transposed for y @ W.
    w1 = jax.random.normal(k1, (C, CR), jnp.float32) * 0.1   # Linear(C -> C//r).T
    w2 = jax.random.normal(k2, (CR, C), jnp.float32) * 0.1   # Linear(C//r -> C).T

    out = se_attention(x, w1, w2, K)
    jax.block_until_ready(out)

    ref = se_attention_ref(x, w1, w2, K)
    assert out.shape == (B, K, H, W)
    assert jnp.allclose(out, ref, atol=1e-5, rtol=1e-5)
    print("KERNEL_OK")
</pallas_src>

<mosaic_0001>
module attributes {stable_mosaic.version = 11 : i64} {
  func.func @se_select_kernel(%arg0: i32, %arg1: memref<2x18x256xf32, #tpu.memory_space<vmem>>, %arg2: memref<18x6xf32, #tpu.memory_space<vmem>>, %arg3: memref<6x18xf32, #tpu.memory_space<vmem>>, %arg4: memref<2x256xf32, #tpu.memory_space<vmem>>) attributes {dimension_semantics = [#tpu.dimension_semantics<parallel>], iteration_bounds = array<i64: 1>, scalar_prefetch = 0 : i64, scratch_operands = 0 : i64, tpu.core_type = #tpu.core_type<tc>, window_params = [{transform_indices = @transform_0, window_bounds = array<i64: 2, 18, 256>}, {pipeline_mode = #tpu.pipeline_mode<synchronous>, transform_indices = @transform_1, window_bounds = array<i64: 18, 6>}, {pipeline_mode = #tpu.pipeline_mode<synchronous>, transform_indices = @transform_2, window_bounds = array<i64: 6, 18>}, {transform_indices = @transform_3, window_bounds = array<i64: 2, 256>}]} {
    %c0 = arith.constant 0 : index
    %c0_0 = arith.constant 0 : index
    %c0_1 = arith.constant 0 : index
    %0 = vector.load %arg1[%c0, %c0_0, %c0_1] : memref<2x18x256xf32, #tpu.memory_space<vmem>>, vector<2x18x256xf32>
    %cst = arith.constant dense<0.000000e+00> : vector<2x18xf32>
    %1 = vector.multi_reduction <add>, %0, %cst [2] : vector<2x18x256xf32> to vector<2x18xf32>
    %cst_2 = arith.constant 2.560000e+02 : f32
    %2 = vector.broadcast %cst_2 : f32 to vector<2x18xf32>
    %3 = arith.divf %1, %2 : vector<2x18xf32>
    %c0_3 = arith.constant 0 : index
    %c0_4 = arith.constant 0 : index
    %4 = vector.load %arg2[%c0_3, %c0_4] : memref<18x6xf32, #tpu.memory_space<vmem>>, vector<18x6xf32>
    %cst_5 = arith.constant dense<0.000000e+00> : vector<2x6xf32>
    %5 = tpu.matmul %3, %4, %cst_5 {dimension_numbers = #tpu.dot_dimension_numbers<[1], [0], [0], [1], [0, 0, 1, 1], [], []>} : vector<2x18xf32>, vector<18x6xf32>, vector<2x6xf32> -> vector<2x6xf32>
    %cst_6 = arith.constant 0.000000e+00 : f32
    %6 = vector.broadcast %cst_6 : f32 to vector<2x6xf32>
    %7 = arith.maximumf %5, %6 : vector<2x6xf32>
    %c0_7 = arith.constant 0 : index
    %c0_8 = arith.constant 0 : index
    %8 = vector.load %arg3[%c0_7, %c0_8] : memref<6x18xf32, #tpu.memory_space<vmem>>, vector<6x18xf32>
    %cst_9 = arith.constant dense<0.000000e+00> : vector<2x18xf32>
    %9 = tpu.matmul %7, %8, %cst_9 {dimension_numbers = #tpu.dot_dimension_numbers<[1], [0], [0], [1], [0, 0, 1, 1], [], []>} : vector<2x6xf32>, vector<6x18xf32>, vector<2x18xf32> -> vector<2x18xf32>
    %10 = arith.negf %9 : vector<2x18xf32>
    %11 = math.exp %10 : vector<2x18xf32>
    %cst_10 = arith.constant 1.000000e+00 : f32
    %12 = vector.broadcast %cst_10 : f32 to vector<2x18xf32>
    %13 = arith.addf %12, %11 : vector<2x18xf32>
    %14 = arith.divf %12, %13 : vector<2x18xf32>
    %15 = tpu.iota {dimensions = array<i32: 1>} : vector<2x18xi32>
    %16 = arith.sitofp %15 : vector<2x18xi32> to vector<2x18xf32>
    %cst_11 = arith.constant dense<0xFF800000> : vector<2xf32>
    %17 = vector.multi_reduction <maximumf>, %14, %cst_11 [1] : vector<2x18xf32> to vector<2xf32>
    %18 = vector.shape_cast %17 : vector<2xf32> to vector<2x1xf32>
    %19 = vector.broadcast %18 : vector<2x1xf32> to vector<2x18xf32>
    %20 = arith.cmpf oeq, %14, %19 : vector<2x18xf32>
    %cst_12 = arith.constant 1.800000e+01 : f32
    %21 = vector.broadcast %cst_12 : f32 to vector<2x18xf32>
    %22 = arith.select %20, %16, %21 : vector<2x18xi1>, vector<2x18xf32>
    %cst_13 = arith.constant dense<0x7F800000> : vector<2xf32>
    %23 = vector.multi_reduction <minimumf>, %22, %cst_13 [1] : vector<2x18xf32> to vector<2xf32>
    %24 = vector.shape_cast %23 : vector<2xf32> to vector<2x1xf32>
    %25 = vector.broadcast %24 : vector<2x1xf32> to vector<2x18xf32>
    %26 = arith.cmpf oeq, %16, %25 : vector<2x18xf32>
    %27 = arith.extui %26 : vector<2x18xi1> to vector<2x18xi32>
    %28 = arith.sitofp %27 : vector<2x18xi32> to vector<2x18xf32>
    %cst_14 = arith.constant 0.000000e+00 : f32
    %29 = vector.broadcast %cst_14 : f32 to vector<2x1xf32>
    %cst_15 = arith.constant 0.000000e+00 : f32
    %30 = vector.broadcast %cst_15 : f32 to vector<2x18xf32>
    %cst_16 = arith.constant 0.000000e+00 : f32
    %31 = vector.broadcast %cst_16 : f32 to vector<2x1xf32>
    %32 = arith.cmpf oeq, %29, %31 : vector<2x1xf32>
    %33 = vector.broadcast %18 : vector<2x1xf32> to vector<2x18xf32>
    %34 = arith.mulf %28, %33 : vector<2x18xf32>
    %cst_17 = arith.constant 0.000000e+00 : f32
    %35 = vector.shape_cast %32 : vector<2x1xi1> to vector<2x1xi1>
    %36 = vector.broadcast %35 : vector<2x1xi1> to vector<2x18xi1>
    %37 = vector.broadcast %cst_17 : f32 to vector<2x18xf32>
    %38 = arith.select %36, %34, %37 : vector<2x18xi1>, vector<2x18xf32>
    %39 = arith.addf %30, %38 : vector<2x18xf32>
    %40 = vector.shape_cast %39 : vector<2x18xf32> to vector<2x1x18xf32>
    "tpu.trace_start"() <{level = 10 : i32, message = "bkc,bcl->bkl"}> : () -> ()
    %cst_18 = arith.constant dense<0.000000e+00> : vector<2x1x256xf32>
    %41 = tpu.matmul %40, %0, %cst_18 {dimension_numbers = #tpu.dot_dimension_numbers<[2], [1], [1], [2], [0, 0, 0, 1, 1, 2], [0], [0]>} : vector<2x1x18xf32>, vector<2x18x256xf32>, vector<2x1x256xf32> -> vector<2x1x256xf32>
    "tpu.trace_stop"() : () -> ()
    %42 = vector.shape_cast %41 : vector<2x1x256xf32> to vector<2x256xf32>
    %c0_19 = arith.constant 0 : index
    %c0_20 = arith.constant 0 : index
    %43 = vector.load %arg4[%c0_19, %c0_20] : memref<2x256xf32, #tpu.memory_space<vmem>>, vector<2x256xf32>
    tpu.vector_store %arg4[%c0_19, %c0_20], %42 {strides = array<i32>} : memref<2x256xf32, #tpu.memory_space<vmem>>, vector<2x256xf32>,
    return
  }
  func.func @transform_0(%arg0: i32) -> (i32, i32, i32) {
    %c0_i32 = arith.constant 0 : i32
    %c0_i32_0 = arith.constant 0 : i32
    %c0_i32_1 = arith.constant 0 : i32
    return %arg0, %c0_i32, %c0_i32_0 : i32, i32, i32
  }
  func.func @transform_1(%arg0: i32) -> (i32, i32) {
    %c0_i32 = arith.constant 0 : i32
    %c0_i32_0 = arith.constant 0 : i32
    %c0_i32_1 = arith.constant 0 : i32
    return %c0_i32, %c0_i32_0 : i32, i32
  }
  func.func @transform_2(%arg0: i32) -> (i32, i32) {
    %c0_i32 = arith.constant 0 : i32
    %c0_i32_0 = arith.constant 0 : i32
    %c0_i32_1 = arith.constant 0 : i32
    return %c0_i32, %c0_i32_0 : i32, i32
  }
  func.func @transform_3(%arg0: i32) -> (i32, i32) {
    %c0_i32 = arith.constant 0 : i32
    %c0_i32_0 = arith.constant 0 : i32
    return %arg0, %c0_i32 : i32, i32
  }
}

</mosaic_0001>

<bundles_post_ra>
// kernel: tpu_custom_call.1
= control target key start
LH: loop header
LB: loop body
LE: loop exit
PB: predicated region body
PF: predicated region fallthrough
CT: control target
= control target key end

     0   :  { %vm33_vm0 = vcmask 1041408   ;;  %s758_s0 = inlined_call_operand.vmem [shape: f32[2,18,256], index: 0, kind: input, shape index: {}]   ;;  %s759_s1 = inlined_call_operand.vmem [shape: f32[18,6], index: 1, kind: input, shape index: {}]   ;;  %s760_s2 = inlined_call_operand.vmem [shape: f32[6,18], index: 2, kind: input, shape index: {}]   ;;  %s761_s3 = inlined_call_operand.hbm [shape: f32[2,256], index: 3, kind: output, shape index: {}]  }
   0x1   :  { %v618_v0 = vld [vmem:[%s758_s0 + $0x30] sm:$0xff]  ;;  %v22_v1 = vld [vmem:[%s758_s0 + $0x38] sm:$0xff]  ;;  %v626_v2 = vld [vmem:[%s758_s0 + $0x40] sm:$0xff] }
   0x2   :  { %v24_v3 = vld [vmem:[%s758_s0 + $0x48] sm:$0xff]  ;;  %v39_v4 = vadd.f32 %v22_v1, %v618_v0  ;;  %v553_v5 = vpack.c.bf16 %v626_v2, %v618_v0  ;;  %v637_v6 = vld [vmem:[%s758_s0] sm:$0xff]  ;;  %v647_v8 = vld [vmem:[%s758_s0 + $0x10] sm:$0xff] }
   0x3   :  { %v642_v7 = vld [vmem:[%s758_s0 + $0x8] sm:$0xff]  ;;  %v652_v9 = vld [vmem:[%s758_s0 + $0x18] sm:$0xff]  ;;  %v659_v11 = vld [vmem:[%s758_s0 + $0x50] sm:$0x3]  ;;  %v549_v13 = vpack.c.bf16 %v647_v8, %v637_v6  ;;  %v42_v14 = vadd.f32 %v24_v3, %v626_v2 }
   0x4   :  { %v27_v10 = vadd.f32 %v642_v7, %v637_v6  ;;  %40 = vadd.xlane.f32.xlu1 %v39_v4  ;;  %v547_v12 = vpack.c.bf16 %v652_v9, %v642_v7  ;;  %v669_v15 = vld [vmem:[%s758_s0 + $0x58] sm:$0x3]  ;;  %v674_v16 = vld [vmem:[%s758_s0 + $0x20] sm:$0x3]  ;;  %v30_v17 = vadd.f32 %v652_v9, %v647_v8  ;;  %v45_v18 = vsel %vm33_vm0, %v659_v11, 0.0 }
   0x5   :  { %v46_v19 = vsel %vm33_vm0, %v669_v15, 0.0  ;;  %v685_v20 = vld [vmem:[%s758_s0 + $0x28] sm:$0x3]  ;;  %v34_v21 = vsel %vm33_vm0, %v674_v16, 0.0 }
   0x6   :  { %28 = vadd.xlane.f32.xlu0 %v27_v10  ;;  %v35_v22 = vsel %vm33_vm0, %v685_v20, 0.0 }
   0x7   :  { %8 = vsyncpa [#allocation3], 0  ;;  %v47_v23 = vadd.f32 %v46_v19, %v45_v18  ;;  %v36_v24 = vadd.f32 %v35_v22, %v34_v21  ;;  %v57_v25 = vld [vmem:[%s759_s1] sm:$0xff]  ;;  %v58_v26 = vld [vmem:[%s759_s1 + $0x8] sm:$0xff]  ;;  %v589_v28 = vmov 0.0|0.0   ;;  %v551_v29 = vpack.c.bf16 %v24_v3, %v22_v1 }
   0x8   :  { %43 = vadd.xlane.f32.xlu1 %v42_v14  ;;  %v545_v27 = vpack.c.bf16 %v58_v26, %v57_v25  ;;  %544 = vmatprep.subr.bf16.mxu0 %v589_v28  ;;  %v59_v30 = vld [vmem:[%s759_s1 + $0x10] sm:$0x3]  ;;  %v590_v31 = vmov 0.0   ;;  %vm591_vm1 = vmmov 0   ;;  %v66_v32 = vlaneseq  ;;  %v179_v63 = vld [vmem:[%s760_s2] sm:$0x3f] }
   0x9   :  { %536 = vmatprep.mubr.msk.f32.mxu0 %vm591_vm1, %v590_v31  ;;  %539 = vmatprep.subr.mxu1 %v590_v31  ;;  %vm77_vm2 = vcmask 130112   ;;  %vm84_vm3 = vcmask 195712   ;;  %vm100_vm4 = vcmask 1041409   ;;  %vm102_vm5 = vcmask 146432   ;;  %s594_s2 = smov [#allocation2]  }
   0xa   :  { %31 = vadd.xlane.f32.xlu0 %v30_v17  ;;  %546 = vmatpush3.bf16.msra.mxu0 %v545_v27  ;;  %v705_v33 = vand.u32 127, %v66_v32  ;;  %v708_v37 = vshrl.u32 %v66_v32, 7  ;;  %vm184_vm6 = vcmask 1045504   ;;  %vm180_vm7 = vcmask 48128   ;;  %s504_s15 = sshll.u32 %s594_s2, 4  ;;  %s505_s15 = int_to_ptr.vmem [resolvable:$true] %s504_s15 }
   0xb   :  { %534 = vmatprep.subr.mxu0 %v590_v31  ;;  %541 = vmatprep.mubr.msk.f32.mxu1 %vm591_vm1, %v590_v31  ;;  %vm265_vm8 = vcmask 140288   ;;  %v592_v14 = vmov 1966171168   ;;  %v593_v25 = vmov 1983009808   ;;  %vm490_vm11 = vcmask 1043459   ;;  %p570_p1 = scmp.lt.s32.totalorder %s505_s15, %s505_s15 }
   0xc   :  { %48 = vadd.xlane.f32.xlu1 %v47_v23  ;;  %v72_v35 = vadd.s32 4294967288, %v705_v33  ;;  %v79_v38 = vadd.s32 4294967280, %v705_v33  ;;  %v70_v43 = vsub.s32 %v705_v33, %v708_v37  ;;  %540 = vmatpush3.msk.msra.mxu1 %vm184_vm6, %v179_v63  ;;  %v264_v6 = vcvt.s32.f32 %v705_v33  ;;  %s565_s16 = scalar_lea.vmem %s505_s15, 64 }
   0xd   :  { %548 = vmatprep.subr.bf16.mxu1 %v547_v12  ;;  %v470_v26 = vunpack.c.l.s4 %v593_v25  ;;  %vm492_vm12 = vcmask 1045509   ;;  %vm494_vm13 = vcmask 1047559   ;;  %p566_p0 = scmp.ne.s32.totalorder %s505_s15, %s565_s16  ;;  %p571_p2 = scmp.lt.s32.totalorder %s565_s16, %s565_s16 }
   0xe   :  { %37 = vadd.xlane.f32.xlu0 %v36_v24  ;;  %535 = vmatpush3.msk.msra.mxu0 %vm33_vm0, %v59_v30  ;;  %v75_v39 = vsub.s32 %v72_v35, %v708_v37  ;;  %v82_v47 = vsub.s32 %v79_v38, %v708_v37 }
   0xf   :  { %552 = vmatprep.subr.bf16.mxu0 %v551_v29  ;;  %v471_v28 = vunpack.c.0.s8 %v470_v26  ;;  %p572_p3 = por %p571_p2, %p570_p1 }
  0x11   :  { %p573_p4 = pnand %p572_p3, %p566_p0 }
  0x91   :  { %v41_v34 = vpop.xlane.xlu1 %40 }
  0x92   :  { %v54_v44 = vmul.f32 0.00390625, %v41_v34  ;;  %v474_v34 = vsub.s32 %v471_v28, %v708_v37 }
  0x93   :  { %v29_v36 = vpop.xlane.xlu0 %28 }
  0x94   :  { %v51_v46 = vmul.f32 0.00390625, %v29_v36  ;;  %v89_v53 = vrot.slane %v54_v44, %v70_v43 }
  0x95   :  { %v44_v40 = vpop.xlane.xlu1 %43 }
  0x96   :  { %v55_v41 = vmul.f32 0.00390625, %v44_v40  ;;  %v71_v55 = vrot.slane %v51_v46, %v70_v43 }
  0x97   :  { %v32_v42 = vpop.xlane.xlu0 %31 }
  0x98   :  { %v52_v45 = vmul.f32 0.00390625, %v32_v42  ;;  %v93_v48 = vrot.slane %v55_v41, %v75_v39 }
  0x99   :  { %v49_v49 = vpop.xlane.xlu1 %48 }
  0x9a   :  { %v76_v50 = vrot.slane %v52_v45, %v75_v39  ;;  %v56_v51 = vmul.f32 0.00390625, %v49_v49  ;;  %v94_v57 = vsel %vm77_vm2, %v93_v48, %v89_v53 }
  0x9b   :  { %v38_v52 = vpop.xlane.xlu0 %37 }
  0x9c   :  { %v53_v54 = vmul.f32 0.00390625, %v38_v52  ;;  %v98_v56 = vrot.slane %v56_v51, %v82_v47  ;;  %v78_v59 = vsel %vm77_vm2, %v76_v50, %v71_v55 }
  0x9e   :  { %v83_v58 = vrot.slane %v53_v54, %v82_v47  ;;  %v99_v60 = vsel %vm84_vm3, %v98_v56, %v94_v57 }
  0xa0   :  { %v85_v61 = vsel %vm84_vm3, %v83_v58, %v78_v59 }
  0xa1   :  { %v101_v62 = vsel %vm100_vm4, %v99_v60, %v85_v61 }
  0xa2   :  { %537 = vmatmul.mubr.msk.f32.vlgmr.msra.gmra.mrb[0].mxu0 %vm102_vm5, %v101_v62 }
  0xa3   :  { %554 = vmatpush1.bf16.msra.mxu0 %v553_v5  ;;  %457 = vmatprep.mubr.f32.mxu0 %v590_v31 }
  0xa4   :  { %521 = vmatprep.subr.msk.mxu0 %vm33_vm0, %v669_v15  ;;  %v285_v15 = vunpack.c.l.s4 %v592_v14 }
  0xa7   :  { %522 = vmatpush1.msk.msra.mxu0 %vm33_vm0, %v659_v11 }
 0x175   :  { %v174_v0 = vpop.f32.mrb[0].mxu0 }
 0x176   :  { %v178_v1 = vmax.f32 %v174_v0, 0.0  ;;  %v538_v2 = vpop.f32.mrb[1].mxu0 }
 0x178   :  { %542 = vmatmul.mubr.msk.f32.vlgmr.msra.gmra.mrb[0].mxu1 %vm180_vm7, %v178_v1 }
 0x179   :  { %550 = vmatpush1.bf16.msra.mxu1 %v549_v13  ;;  %378 = vmatprep.mubr.f32.mxu1 %v590_v31 }
 0x17a   :  { %518 = vmatprep.subr.msk.mxu1 %vm33_vm0, %v685_v20 }
 0x17d   :  { %519 = vmatpush1.msk.msra.mxu1 %vm33_vm0, %v674_v16  ;;  %v286_v16 = vunpack.c.0.s8 %v285_v15 }
 0x17f   :  { %v289_v18 = vsub.s32 %v286_v16, %v708_v37 }
 0x24b   :  { %v254_v3 = vpop.f32.mrb[0].mxu1 }
 0x24c   :  { %v516_v4 = vmul.f32 -1.442695, %v254_v3  ;;  %v543_v5 = vpop.f32.mrb[1].mxu1 }
 0x24e   :  { %561 = vpow2.f32 %v516_v4 }
 0x258   :  { %v562_v7 = vpop.eup %561 }
 0x259   :  { %v261_v9 = vadd.f32 1.0, %v562_v7 }
 0x25b   :  { %563 = vrcp.f32 %v261_v9 }
 0x265   :  { %v564_v10 = vpop.eup %563 }
 0x266   :  { %v266_v11 = vsel %vm265_vm8, %v564_v10, -inf }
 0x267   :  { %267 = vmax.xlane.f32.xlu0 %v266_v11 }
 0x2f4   :  { %v268_v8 = vpop.xlane.xlu0 %267 }
 0x2f5   :  { %vm269_vm9 = vcmp.eq.f32.partialorder %v564_v10, %v268_v8 }
 0x2f6   :  { %v270_v12 = vsel %vm269_vm9, %v264_v6, 18.0 }
 0x2f7   :  { %v271_v13 = vsel %vm265_vm8, %v270_v12, inf }
 0x2f8   :  { %272 = vmin.xlane.f32.xlu1 %v271_v13 }
 0x385   :  { %v273_v17 = vpop.xlane.xlu1 %272 }
 0x386   :  { %vm274_vm10 = vcmp.eq.f32.partialorder %v264_v6, %v273_v17 }
 0x387   :  { %v517_v19 = vsel %vm274_vm10, 1.0, %v590_v31 }
 0x388   :  { %v278_v20 = vmul.f32 %v517_v19, %v268_v8 }
 0x38a   :  { %v290_v21 = vrot.slane %v278_v20, %v289_v18 }
 0x38c   :  { %v291_v22 = vcombine.high %v290_v21, %v290_v21  ;;  %v298_v23 = vrot.slane %v290_v21, %v289_v18 }
 0x38e   :  { %v305_v24 = vrot.slane %v291_v22, %v289_v18  ;;  %520 = vmatmul.mubr.msk.f32.vlgmr.msra.gmra.mrb[2].mxu1 %vm102_vm5, %v298_v23 }
 0x390   :  { %523 = vmatmul.mubr.msk.f32.vlgmr.msra.gmra.mrb[2].mxu0 %vm102_vm5, %v305_v24 }
 0x461   :  { %v380_v27 = vpop.f32.mrb[2].mxu1 }
 0x462   :  { %v382_v29 = vpop.f32.mrb[3].mxu1 }
 0x463   :  { %v468_v30 = vcombine.low %v380_v27, %v382_v29  ;;  %v459_v32 = vpop.f32.mrb[2].mxu0 }
 0x464   :  { %v461_v33 = vpop.f32.mrb[3].mxu0 }
 0x465   :  { %v476_v31 = vcombine.low %v459_v32, %v461_v33  ;;  %v475_v36 = vrot.slane %v468_v30, %v474_v34 }
 0x467   :  { %v483_v35 = vrot.slane %v476_v31, %v474_v34 }
 0x469   :  { %v488_v38 = vrot.slane %v483_v35, 7 }
 0x46b   :  { %v489_v39 = vsel %vm100_vm4, %v488_v38, %v475_v36 }
 0x46c   :  { %v491_v40 = vsel %vm490_vm11, %v488_v38, %v489_v39 }
 0x46d   :  { %v493_v41 = vsel %vm492_vm12, %v488_v38, %v491_v40 }
 0x46e   :  { %v495_v42 = vsel %vm494_vm13, %v488_v38, %v493_v41 }
 0x46f   :  { %497 = vst [vmem:[#allocation2] sm:$0xf] %v495_v42 }
 0x470   :  { %576 = shalt.err (!%p573_p4)
}
 0x471   :  { %s577_s19 = scalar_lea.hbm %s761_s3, 64 }
 0x472   :  { %p578_p5 = scmp.ne.s32.totalorder %s761_s3, %s577_s19  ;;  %p581_p6 = scmp.lt.u32.totalorder %s577_s19, %s761_s3 }
 0x474   :  { %p583_p7 = pnand %p581_p6, %p578_p5 }
 0x476   :  { %586 = shalt.err (!%p583_p7)
}
 0x477   :  { %507 = dma.vmem_to_hbm [thread:$0]  %s505_s15, 64, %s761_s3, [#allocation3]  }
 0x478   :  { %587 = dma.done.wait [#allocation3], 64  }
 0x479   :  { %588 = vsyncadd [#allocation3], 4294967232 }
 0x47a   :  { %511 = vsyncpa [#allocation3], 1 }

</bundles_post_ra>
